<compile_context>
chip_gen: v6e
topology: v6e:2x2x1
jax: 0.10.0
libtpu: 0.0.40
codegen_flags: <defaults>
</compile_context>

<pallas_src>
import functools

import numpy as np
import jax
import jax.numpy as jnp
from jax.experimental import pallas as pl
from jax.experimental.pallas import tpu as pltpu


# ----------------------------- helpers (glue) -----------------------------

def linear_space(backcast_length, forecast_length):
    ls = np.arange(-backcast_length, forecast_length, 1) / forecast_length
    b_ls = np.abs(np.flip(ls[:backcast_length]))
    f_ls = ls[backcast_length:]
    return b_ls, f_ls


def trend_basis(t, p):
    # T[i, w] = t[w] ** i   for i in range(p)   (p == thetas_dim <= 4)
    return np.stack([t ** i for i in range(p)], axis=0).astype(np.float32)


def _cdiv(a, b):
    return -(-a // b)


def _round_up(x, m):
    return _cdiv(x, m) * m


# ------------------------------ Pallas kernel ------------------------------

def trend_block_kernel(x_ref, wb_ref, wf_ref, bb_ref, bf_ref, pb_ref, pf_ref):
    # x_ref  : (TMq, Kp)       PACK original rows packed per 128-lane LHS row
    # wb_ref : (Kp, PACK*B)    kron(I_PACK, W^T @ T_b)   (block-diagonal)
    # wf_ref : (Kp, PACK*F)    kron(I_PACK, W^T @ T_f)
    # bb_ref : (1, PACK*B)     tiled folded bias  b @ T_b
    # bf_ref : (1, PACK*F)     tiled folded bias  b @ T_f
    # pb_ref : (TMq, PACK*B)   = row-major bitcast view of backcast rows
    # pf_ref : (TMq, PACK*F)   = row-major bitcast view of forecast rows
    x = x_ref[...]
    pb = jnp.dot(x, wb_ref[...], preferred_element_type=jnp.float32)
    pf = jnp.dot(x, wf_ref[...], preferred_element_type=jnp.float32)
    pb_ref[...] = (pb + bb_ref[...]).astype(pb_ref.dtype)
    pf_ref[...] = (pf + bf_ref[...]).astype(pf_ref.dtype)


@functools.partial(jax.jit,
                   static_argnames=("backcast_length", "forecast_length",
                                    "tile_m"))
def trend_block_forward(x_nchw, weight, bias, *, backcast_length,
                        forecast_length, tile_m=8192):
    """x_nchw: (N, C=seq_length, V, L) float32 — output of CoRex.
    weight: (thetas_dim, seq_length) 1x1-conv weight; bias: (thetas_dim,).
    Returns (backcast, forecast) with shapes (N, L, V, backcast_length) and
    (N, L, V, forecast_length), matching the PyTorch module."""
    N, C, V, L = x_nchw.shape
    D = weight.shape[0]
    assert D <= 4, "thetas_dim is too big."
    B, F = backcast_length, forecast_length

    # ----- fold the 1x1 conv into the trend bases (exact algebra) -----
    #   (x @ W^T + b) @ T  ==  x @ (W^T @ T) + b @ T
    b_ls, f_ls = linear_space(B, F)
    T_b = jnp.asarray(trend_basis(b_ls, D))                 # (D, B)
    T_f = jnp.asarray(trend_basis(f_ls, D))                 # (D, F)
    w_t = jnp.asarray(weight).astype(jnp.float32).T          # (C, D)
    b1 = jnp.asarray(bias).astype(jnp.float32).reshape(1, D)
    WTb = w_t @ T_b                                          # (C, B)
    WTf = w_t @ T_f                                          # (C, F)
    bTb = (b1 @ T_b).reshape(-1)                             # (B,)
    bTf = (b1 @ T_f).reshape(-1)                             # (F,)

    # ----- pack PACK rows per 128-lane group; kron-expand the weights -----
    PACK = max(1, 128 // C)
    Kp = PACK * C
    eye = jnp.eye(PACK, dtype=jnp.float32)
    Wg_b = jnp.kron(eye, WTb)                                # (Kp, PACK*B)
    Wg_f = jnp.kron(eye, WTf)                                # (Kp, PACK*F)
    bg_b = jnp.tile(bTb, PACK).reshape(1, PACK * B)
    bg_f = jnp.tile(bTf, PACK).reshape(1, PACK * F)

    # (N, C, V, L) -> (N, L, V, C) -> (M, C),  M = N*L*V  (row order n, l, v).
    # NOTE: this transpose materializes as a real HBM copy (pallas_call is an
    # opaque custom call); relayouting the input (32 B/row) is cheaper than
    # relayouting the 96 B/row of outputs.
    M = N * L * V
    x2d = jnp.transpose(x_nchw, (0, 3, 2, 1)).reshape(M, C).astype(jnp.float32)

    # ----- balanced tile selection in packed-row space -----
    Mq = _cdiv(M, PACK)                      # packed rows needed
    tmq_target = max(8, tile_m // PACK)      # target packed rows per tile
    num_tiles = _cdiv(Mq, tmq_target)
    if Mq >= 16:
        num_tiles = max(num_tiles, 2)        # v7x megacore: feed both TCs
    TMq = _round_up(_cdiv(Mq, num_tiles), 8)
    Mq_pad = _round_up(Mq, TMq)
    grid = (Mq_pad // TMq,)
    M_pad = Mq_pad * PACK

    if M_pad != M:
        x2d = jnp.pad(x2d, ((0, M_pad - M), (0, 0)))
    xp = x2d.reshape(Mq_pad, Kp)             # free row-major bitcast

    Nb, Nf = PACK * B, PACK * F
    cost = pl.CostEstimate(
        flops=2 * Mq_pad * Kp * (Nb + Nf),
        transcendentals=0,
        bytes_accessed=4 * (Mq_pad * (Kp + Nb + Nf)
                            + Kp * (Nb + Nf) + Nb + Nf),
    )

    pb, pf = pl.pallas_call(
        trend_block_kernel,
        out_shape=(
            jax.ShapeDtypeStruct((Mq_pad, Nb), jnp.float32),
            jax.ShapeDtypeStruct((Mq_pad, Nf), jnp.float32),
        ),
        grid_spec=pltpu.PrefetchScalarGridSpec(
            num_scalar_prefetch=0,
            grid=grid,
            in_specs=[
                pl.BlockSpec((TMq, Kp), lambda i: (i, 0)),    # packed rows
                pl.BlockSpec((Kp, Nb), lambda i: (0, 0)),     # backcast weight
                pl.BlockSpec((Kp, Nf), lambda i: (0, 0)),     # forecast weight
                pl.BlockSpec((1, Nb), lambda i: (0, 0)),      # backcast bias
                pl.BlockSpec((1, Nf), lambda i: (0, 0)),      # forecast bias
            ],
            out_specs=[
                pl.BlockSpec((TMq, Nb), lambda i: (i, 0)),
                pl.BlockSpec((TMq, Nf), lambda i: (i, 0)),
            ],
        ),
        compiler_params=pltpu.CompilerParams(
            dimension_semantics=("parallel",)),
        cost_estimate=cost,
    )(xp, Wg_b, Wg_f, bg_b, bg_f)

    # Packed outputs are exact row-major bitcast views of the per-row outputs.
    backcast = pb.reshape(M_pad, B)[:M].reshape(N, L, V, B)
    forecast = pf.reshape(M_pad, F)[:M].reshape(N, L, V, F)
    return backcast, forecast


# --------------------------- pure-JAX reference ----------------------------

def trend_block_reference(x_nchw, weight, bias, backcast_length,
                          forecast_length):
    b_ls, f_ls = linear_space(backcast_length, forecast_length)
    D = weight.shape[0]
    T_b = jnp.asarray(trend_basis(b_ls, D))
    T_f = jnp.asarray(trend_basis(f_ls, D))
    # 1x1 Conv2d: thetas[n,d,v,l] = sum_c W[d,c] x[n,c,v,l] + b[d]
    thetas = jnp.einsum('dc,ncvl->ndvl', jnp.asarray(weight), x_nchw) \
        + jnp.asarray(bias)[None, :, None, None]
    back = jnp.einsum('ncvl,cw->nwvl', thetas, T_b)    # (N, B, V, L)
    fore = jnp.einsum('ncvl,cw->nwvl', thetas, T_f)
    return jnp.transpose(back, (0, 3, 2, 1)), jnp.transpose(fore, (0, 3, 2, 1))


# ---------------------------------- main -----------------------------------

if __name__ == "__main__":
    # Small, shape-consistent config.
    N = 2                 # batch
    seq_length = 8        # CoRex out_dim == Conv in_channels
    num_nodes = 16        # V
    L = 4                 # trailing spatial dim
    thetas_dim = 4        # must be <= 4
    backcast_length = 16
    forecast_length = 8

    key = jax.random.PRNGKey(0)
    kx, kw, kb = jax.random.split(key, 3)

    # Input = CoRex output, PyTorch NCHW layout (N, seq_length, V, L).
    x = jax.random.normal(kx, (N, seq_length, num_nodes, L), dtype=jnp.float32)

    # Deterministic 1x1-conv parameters (share_thetas=True -> single conv
    # shared by theta_b_fc and theta_f_fc).
    weight = jax.random.normal(kw, (thetas_dim, seq_length),
                               dtype=jnp.float32) * 0.1
    bias = jax.random.normal(kb, (thetas_dim,), dtype=jnp.float32) * 0.1

    backcast, forecast = trend_block_forward(
        x, weight, bias,
        backcast_length=backcast_length, forecast_length=forecast_length)
    jax.block_until_ready((backcast, forecast))

    ref_back, ref_fore = trend_block_reference(
        x, weight, bias, backcast_length, forecast_length)

    assert backcast.shape == (N, L, num_nodes, backcast_length), backcast.shape
    assert forecast.shape == (N, L, num_nodes, forecast_length), forecast.shape
    np.testing.assert_allclose(np.asarray(backcast), np.asarray(ref_back),
                               rtol=1e-5, atol=1e-5)
    np.testing.assert_allclose(np.asarray(forecast), np.asarray(ref_fore),
                               rtol=1e-5, atol=1e-5)

    print("KERNEL_OK")
</pallas_src>

<mosaic_0001>
module attributes {stable_mosaic.version = 11 : i64} {
  func.func @trend_block_kernel(%arg0: i32, %arg1: memref<8x128xf32, #tpu.memory_space<vmem>>, %arg2: memref<128x256xf32, #tpu.memory_space<vmem>>, %arg3: memref<128x128xf32, #tpu.memory_space<vmem>>, %arg4: memref<1x256xf32, #tpu.memory_space<vmem>>, %arg5: memref<1x128xf32, #tpu.memory_space<vmem>>, %arg6: memref<8x256xf32, #tpu.memory_space<vmem>>, %arg7: memref<8x128xf32, #tpu.memory_space<vmem>>) attributes {dimension_semantics = [#tpu.dimension_semantics<parallel>], iteration_bounds = array<i64: 1>, scalar_prefetch = 0 : i64, scratch_operands = 0 : i64, tpu.core_type = #tpu.core_type<tc>, window_params = [{transform_indices = @transform_0, window_bounds = array<i64: 8, 128>}, {pipeline_mode = #tpu.pipeline_mode<synchronous>, transform_indices = @transform_1, window_bounds = array<i64: 128, 256>}, {pipeline_mode = #tpu.pipeline_mode<synchronous>, transform_indices = @transform_2, window_bounds = array<i64: 128, 128>}, {pipeline_mode = #tpu.pipeline_mode<synchronous>, transform_indices = @transform_3, window_bounds = array<i64: 1, 256>}, {pipeline_mode = #tpu.pipeline_mode<synchronous>, transform_indices = @transform_4, window_bounds = array<i64: 1, 128>}, {transform_indices = @transform_5, window_bounds = array<i64: 8, 256>}, {transform_indices = @transform_6, window_bounds = array<i64: 8, 128>}]} {
    %c0 = arith.constant 0 : index
    %c0_0 = arith.constant 0 : index
    %0 = vector.load %arg1[%c0, %c0_0] : memref<8x128xf32, #tpu.memory_space<vmem>>, vector<8x128xf32>
    %c0_1 = arith.constant 0 : index
    %c0_2 = arith.constant 0 : index
    %1 = vector.load %arg2[%c0_1, %c0_2] : memref<128x256xf32, #tpu.memory_space<vmem>>, vector<128x256xf32>
    %cst = arith.constant dense<0.000000e+00> : vector<8x256xf32>
    %2 = tpu.matmul %0, %1, %cst {dimension_numbers = #tpu.dot_dimension_numbers<[1], [0], [0], [1], [0, 0, 1, 1], [], []>} : vector<8x128xf32>, vector<128x256xf32>, vector<8x256xf32> -> vector<8x256xf32>
    %c0_3 = arith.constant 0 : index
    %c0_4 = arith.constant 0 : index
    %3 = vector.load %arg3[%c0_3, %c0_4] : memref<128x128xf32, #tpu.memory_space<vmem>>, vector<128x128xf32>
    %cst_5 = arith.constant dense<0.000000e+00> : vector<8x128xf32>
    %4 = tpu.matmul %0, %3, %cst_5 {dimension_numbers = #tpu.dot_dimension_numbers<[1], [0], [0], [1], [0, 0, 1, 1], [], []>} : vector<8x128xf32>, vector<128x128xf32>, vector<8x128xf32> -> vector<8x128xf32>
    %c0_6 = arith.constant 0 : index
    %c0_7 = arith.constant 0 : index
    %5 = vector.load %arg4[%c0_6, %c0_7] : memref<1x256xf32, #tpu.memory_space<vmem>>, vector<1x256xf32>
    %6 = vector.broadcast %5 : vector<1x256xf32> to vector<8x256xf32>
    %7 = arith.addf %2, %6 : vector<8x256xf32>
    %c0_8 = arith.constant 0 : index
    %c0_9 = arith.constant 0 : index
    %8 = vector.load %arg6[%c0_8, %c0_9] : memref<8x256xf32, #tpu.memory_space<vmem>>, vector<8x256xf32>
    tpu.vector_store %arg6[%c0_8, %c0_9], %7 {strides = array<i32>} : memref<8x256xf32, #tpu.memory_space<vmem>>, vector<8x256xf32>,
    %c0_10 = arith.constant 0 : index
    %c0_11 = arith.constant 0 : index
    %9 = vector.load %arg5[%c0_10, %c0_11] : memref<1x128xf32, #tpu.memory_space<vmem>>, vector<1x128xf32>
    %10 = vector.broadcast %9 : vector<1x128xf32> to vector<8x128xf32>
    %11 = arith.addf %4, %10 : vector<8x128xf32>
    %c0_12 = arith.constant 0 : index
    %c0_13 = arith.constant 0 : index
    %12 = vector.load %arg7[%c0_12, %c0_13] : memref<8x128xf32, #tpu.memory_space<vmem>>, vector<8x128xf32>
    tpu.vector_store %arg7[%c0_12, %c0_13], %11 {strides = array<i32>} : memref<8x128xf32, #tpu.memory_space<vmem>>, vector<8x128xf32>,
    return
  }
  func.func @transform_0(%arg0: i32) -> (i32, i32) {
    %c0_i32 = arith.constant 0 : i32
    %c0_i32_0 = arith.constant 0 : i32
    return %arg0, %c0_i32 : i32, i32
  }
  func.func @transform_1(%arg0: i32) -> (i32, i32) {
    %c0_i32 = arith.constant 0 : i32
    %c0_i32_0 = arith.constant 0 : i32
    %c0_i32_1 = arith.constant 0 : i32
    return %c0_i32, %c0_i32_0 : i32, i32
  }
  func.func @transform_2(%arg0: i32) -> (i32, i32) {
    %c0_i32 = arith.constant 0 : i32
    %c0_i32_0 = arith.constant 0 : i32
    %c0_i32_1 = arith.constant 0 : i32
    return %c0_i32, %c0_i32_0 : i32, i32
  }
  func.func @transform_3(%arg0: i32) -> (i32, i32) {
    %c0_i32 = arith.constant 0 : i32
    %c0_i32_0 = arith.constant 0 : i32
    %c0_i32_1 = arith.constant 0 : i32
    return %c0_i32, %c0_i32_0 : i32, i32
  }
  func.func @transform_4(%arg0: i32) -> (i32, i32) {
    %c0_i32 = arith.constant 0 : i32
    %c0_i32_0 = arith.constant 0 : i32
    %c0_i32_1 = arith.constant 0 : i32
    return %c0_i32, %c0_i32_0 : i32, i32
  }
  func.func @transform_5(%arg0: i32) -> (i32, i32) {
    %c0_i32 = arith.constant 0 : i32
    %c0_i32_0 = arith.constant 0 : i32
    return %arg0, %c0_i32 : i32, i32
  }
  func.func @transform_6(%arg0: i32) -> (i32, i32) {
    %c0_i32 = arith.constant 0 : i32
    %c0_i32_0 = arith.constant 0 : i32
    return %arg0, %c0_i32 : i32, i32
  }
}

</mosaic_0001>

<bundles_post_ra>
// kernel: tile.10
= control target key start
LH: loop header
LB: loop body
LE: loop exit
PB: predicated region body
PF: predicated region fallthrough
CT: control target
= control target key end

     0   :  { %s28_s0 = inlined_call_operand.vmem [shape: f32[16], index: 0, kind: input, shape index: {}]   ;;  %s29_s1 = inlined_call_operand.vmem [shape: f32[16,16], index: 1, kind: output, shape index: {}]  }
   0x1   :  { %v4_v0 = vld [vmem:[%s28_s0] ss:$0 sm:$0xff] }
   0x2   :  { %5 = vst [vmem:[%s29_s1] sm:$0xff] %v4_v0  ;;  %8 = vst [vmem:[%s29_s1 + $0x8] sm:$0xff] %v4_v0 }

// kernel: tile.11
= control target key start
LH: loop header
LB: loop body
LE: loop exit
PB: predicated region body
PF: predicated region fallthrough
CT: control target
= control target key end

     0   :  { %s7_s6 = smov 3  ;;  %s21_s9 = smov 3  ;;  %vm4_vm0 = vcmask 130048   ;;  %vm11_vm1 = vcmask 1048448   ;;  %vm18_vm2 = vcmask 917248   ;;  %vm25_vm3 = vcmask 786048   ;;  %s131_s0 = inlined_call_operand.vmem [shape: f32[16,16], index: 0, kind: input, shape index: {}]   ;;  %s132_s1 = inlined_call_operand.vmem [shape: f32[1,256], index: 1, kind: output, shape index: {}]  }
   0x1   :  { %v69_v0 = vld [vmem:[%s131_s0 + $0x7] ss:$8 sm:%s7_s6]   ;;  %s84_s10 = smov 112   ;;  %v71_v1 = vld [vmem:[%s131_s0 + $0x5] ss:$8 sm:%s21_s9]   ;;  %s14_s13 = smov 3 }
   0x2   :  { %9 = vrot.lane.b32.xlu0 %v69_v0, %s84_s10  ;;  %s85_s14 = smov 80   ;;  %v70_v2 = vld [vmem:[%s131_s0 + $0x6] ss:$8 sm:%s14_s13]   ;;  %s28_s17 = smov 3  ;;  %vm32_vm4 = vcmask 654848   ;;  %vm39_vm5 = vcmask 523648  }
   0x3   :  { %23 = vrot.lane.b32.xlu1 %v71_v1, %s85_s14  ;;  %v72_v3 = vld [vmem:[%s131_s0 + $0x4] ss:$8 sm:%s28_s17]   ;;  %s35_s20 = smov 3  ;;  %s42_s21 = smov 3  ;;  %vm46_vm6 = vcmask 392448   ;;  %vm53_vm7 = vcmask 261248  }
   0x4   :  { %s86_s22 = smov 96   ;;  %s87_s23 = smov 64   ;;  %v73_v4 = vld [vmem:[%s131_s0 + $0x3] ss:$8 sm:%s35_s20]   ;;  %v74_v5 = vld [vmem:[%s131_s0 + $0x2] ss:$8 sm:%s42_s21]  }
   0x5   :  { %s2_s26 = smov 3  ;;  %s49_s29 = smov 3 }
   0x6   :  { %16 = vrot.lane.b32.xlu0 %v70_v2, %s86_s22  ;;  %v3_v6 = vld [vmem:[%s131_s0] ss:$8 sm:%s2_s26]   ;;  %s88_s3 = smov 48   ;;  %s89_s4 = smov 32  }
   0x7   :  { %30 = vrot.lane.b32.xlu1 %v72_v3, %s87_s23  ;;  %5 = vst.msk [vmem:[#allocation0] ss:$8 sm:$0x3] %vm4_vm0, %v3_v6   ;;  %v75_v7 = vld [vmem:[%s131_s0 + $0x1] ss:$8 sm:%s49_s29]   ;;  %s90_s0 = smov 16  }
   0xa   :  { %37 = vrot.lane.b32.xlu0 %v73_v4, %s88_s3 }
   0xb   :  { %44 = vrot.lane.b32.xlu1 %v74_v5, %s89_s4 }
   0xe   :  { %51 = vrot.lane.b32.xlu0 %v75_v7, %s90_s0 }
  0x74   :  { %v10_v8 = vpop.permute.xlu0 %9  }
  0x75   :  { %12 = vst.msk [vmem:[#allocation0] ss:$8 sm:$0x3] %vm11_vm1, %v10_v8   ;;  %v24_v9 = vpop.permute.xlu1 %23  }
  0x78   :  { %v17_v10 = vpop.permute.xlu0 %16  }
  0x79   :  { %19 = vst.msk [vmem:[#allocation0] ss:$8 sm:$0x3] %vm18_vm2, %v17_v10   ;;  %v31_v11 = vpop.permute.xlu1 %30  }
  0x7a   :  { %26 = vst.msk [vmem:[#allocation0] ss:$8 sm:$0x3] %vm25_vm3, %v24_v9  }
  0x7b   :  { %33 = vst.msk [vmem:[#allocation0] ss:$8 sm:$0x3] %vm32_vm4, %v31_v11  }
  0x7c   :  { %v38_v12 = vpop.permute.xlu0 %37  }
  0x7d   :  { %40 = vst.msk [vmem:[#allocation0] ss:$8 sm:$0x3] %vm39_vm5, %v38_v12   ;;  %v45_v13 = vpop.permute.xlu1 %44  }
  0x7e   :  { %47 = vst.msk [vmem:[#allocation0] ss:$8 sm:$0x3] %vm46_vm6, %v45_v13  }
  0x80   :  { %v52_v14 = vpop.permute.xlu0 %51  }
  0x81   :  { %54 = vst.msk [vmem:[#allocation0] ss:$8 sm:$0x3] %vm53_vm7, %v52_v14  }
  0x88   :  { %v59_v15 = vld [vmem:[#allocation0] sm:$0x1]  ;;  %v64_v16 = vld [vmem:[#allocation0 + $0x8] sm:$0x1] }
  0x89   :  { %62 = vst [vmem:[%s132_s1] sm:$0x1] %v59_v15  ;;  %76 = vst [vmem:[%s132_s1 + $0x1] sm:$0x1] %v64_v16 }

// kernel: tile.14
= control target key start
LH: loop header
LB: loop body
LE: loop exit
PB: predicated region body
PF: predicated region fallthrough
CT: control target
= control target key end

     0   :  { %s28_s0 = inlined_call_operand.vmem [shape: f32[8], index: 0, kind: input, shape index: {}]   ;;  %s29_s1 = inlined_call_operand.vmem [shape: f32[16,8], index: 1, kind: output, shape index: {}]  }
   0x1   :  { %v4_v0 = vld [vmem:[%s28_s0] ss:$0 sm:$0xff] }
   0x2   :  { %5 = vst [vmem:[%s29_s1] sm:$0xff] %v4_v0  ;;  %8 = vst [vmem:[%s29_s1 + $0x8] sm:$0xff] %v4_v0 }

// kernel: tile.15
= control target key start
LH: loop header
LB: loop body
LE: loop exit
PB: predicated region body
PF: predicated region fallthrough
CT: control target
= control target key end

     0   :  { %s133_s10 = smov 120   ;;  %s134_s11 = smov 104   ;;  %vm3_vm0 = vcmask 64512   ;;  %vm9_vm1 = vcmask 1048512   ;;  %vm15_vm2 = vcmask 982912   ;;  %vm21_vm3 = vcmask 917312   ;;  %s209_s0 = inlined_call_operand.vmem [shape: f32[16,8], index: 0, kind: input, shape index: {}]   ;;  %s210_s1 = inlined_call_operand.vmem [shape: f32[1,128], index: 1, kind: output, shape index: {}]  }
   0x1   :  { %v103_v0 = vld [vmem:[%s209_s0 + $0xf] sm:$0x1]   ;;  %v105_v1 = vld [vmem:[%s209_s0 + $0xd] sm:$0x1]   ;;  %v104_v2 = vld [vmem:[%s209_s0 + $0xe] sm:$0x1]  }
   0x2   :  { %7 = vrot.lane.b32.xlu0 %v103_v0, %s133_s10  ;;  %19 = vrot.lane.b32.xlu1 %v105_v1, %s134_s11  ;;  %v106_v3 = vld [vmem:[%s209_s0 + $0xc] sm:$0x1]   ;;  %s135_s16 = smov 112   ;;  %s136_s17 = smov 96   ;;  %v107_v4 = vld [vmem:[%s209_s0 + $0xb] sm:$0x1]  }
   0x3   :  { %v108_v5 = vld [vmem:[%s209_s0 + $0xa] sm:$0x1]   ;;  %v2_v6 = vld [vmem:[%s209_s0] sm:$0x1]   ;;  %s137_s24 = smov 88   ;;  %s138_s25 = smov 80  }
   0x4   :  { %4 = vst.msk [vmem:[#allocation0] sm:$0x1] %vm3_vm0, %v2_v6   ;;  %v109_v7 = vld [vmem:[%s209_s0 + $0x9] sm:$0x1]   ;;  %v110_v8 = vld [vmem:[%s209_s0 + $0x8] sm:$0x1]  }
   0x5   :  { %s139_s30 = smov 72   ;;  %s140_s2 = smov 64   ;;  %v111_v9 = vld [vmem:[%s209_s0 + $0x7] sm:$0x1]   ;;  %v112_v10 = vld [vmem:[%s209_s0 + $0x6] sm:$0x1]  }
   0x6   :  { %13 = vrot.lane.b32.xlu0 %v104_v2, %s135_s16  ;;  %25 = vrot.lane.b32.xlu1 %v106_v3, %s136_s17  ;;  %s141_s7 = smov 56   ;;  %s142_s8 = smov 48   ;;  %v113_v11 = vld [vmem:[%s209_s0 + $0x5] sm:$0x1]   ;;  %v114_v12 = vld [vmem:[%s209_s0 + $0x4] sm:$0x1]  }
   0x7   :  { %s143_s13 = smov 40   ;;  %s144_s14 = smov 32   ;;  %v115_v13 = vld [vmem:[%s209_s0 + $0x3] sm:$0x1]   ;;  %v116_v14 = vld [vmem:[%s209_s0 + $0x2] sm:$0x1]  }
   0x8   :  { %s145_s19 = smov 24   ;;  %s146_s20 = smov 16   ;;  %v117_v15 = vld [vmem:[%s209_s0 + $0x1] sm:$0x1]   ;;  %vm27_vm4 = vcmask 851712   ;;  %vm33_vm5 = vcmask 786112  }
   0x9   :  { %s147_s0 = smov 8   ;;  %vm39_vm6 = vcmask 720512   ;;  %vm45_vm7 = vcmask 654912   ;;  %vm51_vm8 = vcmask 589312   ;;  %vm57_vm9 = vcmask 523712  }
   0xa   :  { %31 = vrot.lane.b32.xlu0 %v107_v4, %s137_s24  ;;  %37 = vrot.lane.b32.xlu1 %v108_v5, %s138_s25  ;;  %vm63_vm10 = vcmask 458112   ;;  %vm69_vm11 = vcmask 392512   ;;  %vm75_vm12 = vcmask 326912   ;;  %vm81_vm13 = vcmask 261312  }
   0xb   :  { %vm87_vm14 = vcmask 195712   ;;  %vm93_vm15 = vcmask 130112  }
   0xe   :  { %43 = vrot.lane.b32.xlu0 %v109_v7, %s139_s30  ;;  %49 = vrot.lane.b32.xlu1 %v110_v8, %s140_s2 }
  0x12   :  { %55 = vrot.lane.b32.xlu0 %v111_v9, %s141_s7  ;;  %61 = vrot.lane.b32.xlu1 %v112_v10, %s142_s8 }
  0x16   :  { %67 = vrot.lane.b32.xlu0 %v113_v11, %s143_s13  ;;  %73 = vrot.lane.b32.xlu1 %v114_v12, %s144_s14 }
  0x1a   :  { %79 = vrot.lane.b32.xlu0 %v115_v13, %s145_s19  ;;  %85 = vrot.lane.b32.xlu1 %v116_v14, %s146_s20 }
  0x1e   :  { %91 = vrot.lane.b32.xlu0 %v117_v15, %s147_s0 }
  0x74   :  { %v8_v16 = vpop.permute.xlu0 %7   ;;  %v20_v17 = vpop.permute.xlu1 %19  }
  0x75   :  { %10 = vst.msk [vmem:[#allocation0] sm:$0x1] %vm9_vm1, %v8_v16  }
  0x78   :  { %v14_v18 = vpop.permute.xlu0 %13   ;;  %v26_v19 = vpop.permute.xlu1 %25  }
  0x79   :  { %16 = vst.msk [vmem:[#allocation0] sm:$0x1] %vm15_vm2, %v14_v18  }
  0x7a   :  { %22 = vst.msk [vmem:[#allocation0] sm:$0x1] %vm21_vm3, %v20_v17  }
  0x7b   :  { %28 = vst.msk [vmem:[#allocation0] sm:$0x1] %vm27_vm4, %v26_v19  }
  0x7c   :  { %v32_v20 = vpop.permute.xlu0 %31   ;;  %v38_v21 = vpop.permute.xlu1 %37  }
  0x7d   :  { %34 = vst.msk [vmem:[#allocation0] sm:$0x1] %vm33_vm5, %v32_v20  }
  0x7e   :  { %40 = vst.msk [vmem:[#allocation0] sm:$0x1] %vm39_vm6, %v38_v21  }
  0x80   :  { %v44_v22 = vpop.permute.xlu0 %43   ;;  %v50_v23 = vpop.permute.xlu1 %49  }
  0x81   :  { %46 = vst.msk [vmem:[#allocation0] sm:$0x1] %vm45_vm7, %v44_v22  }
  0x82   :  { %52 = vst.msk [vmem:[#allocation0] sm:$0x1] %vm51_vm8, %v50_v23  }
  0x84   :  { %v56_v24 = vpop.permute.xlu0 %55   ;;  %v62_v25 = vpop.permute.xlu1 %61  }
  0x85   :  { %58 = vst.msk [vmem:[#allocation0] sm:$0x1] %vm57_vm9, %v56_v24  }
  0x86   :  { %64 = vst.msk [vmem:[#allocation0] sm:$0x1] %vm63_vm10, %v62_v25  }
  0x88   :  { %v68_v26 = vpop.permute.xlu0 %67   ;;  %v74_v27 = vpop.permute.xlu1 %73  }
  0x89   :  { %70 = vst.msk [vmem:[#allocation0] sm:$0x1] %vm69_vm11, %v68_v26  }
  0x8a   :  { %76 = vst.msk [vmem:[#allocation0] sm:$0x1] %vm75_vm12, %v74_v27  }
  0x8c   :  { %v80_v28 = vpop.permute.xlu0 %79   ;;  %v86_v29 = vpop.permute.xlu1 %85  }
  0x8d   :  { %82 = vst.msk [vmem:[#allocation0] sm:$0x1] %vm81_vm13, %v80_v28  }
  0x8e   :  { %88 = vst.msk [vmem:[#allocation0] sm:$0x1] %vm87_vm14, %v86_v29  }
  0x90   :  { %v92_v30 = vpop.permute.xlu0 %91  }
  0x91   :  { %94 = vst.msk [vmem:[#allocation0] sm:$0x1] %vm93_vm15, %v92_v30  }
  0x98   :  { %v99_v31 = vld [vmem:[#allocation0] sm:$0x1] }
  0x99   :  { %102 = vst [vmem:[%s210_s1] sm:$0x1] %v99_v31 }

// kernel: trend_block_forward.1
= control target key start
LH: loop header
LB: loop body
LE: loop exit
PB: predicated region body
PF: predicated region fallthrough
CT: control target
= control target key end

     0   :  { %v297_v1 = vmov 0.0   ;;  %vm298_vm0 = vmmov 0   ;;  %v73_v50 = vlaneseq  ;;  %s514_s1 = inlined_call_operand.vmem [shape: f32[128,256], index: 1, kind: input, shape index: {}]   ;;  %s515_s2 = inlined_call_operand.vmem [shape: f32[128,128], index: 2, kind: input, shape index: {}]   ;;  %s516_s0 = inlined_call_operand.vmem [shape: f32[8,128], index: 0, kind: input, shape index: {}]   ;;  %s517_s3 = inlined_call_operand.vmem [shape: f32[1,256], index: 3, kind: input, shape index: {}]   ;;  %s518_s4 = inlined_call_operand.vmem [shape: f32[1,128], index: 4, kind: input, shape index: {}]   ;;  %s519_s5 = inlined_call_operand.vmem [shape: f32[8,256], index: 5, kind: output, shape index: {0}]   ;;  %s520_s6 = inlined_call_operand.vmem [shape: f32[8,128], index: 6, kind: output, shape index: {1}]  }
   0x1   :  { %v54_v0 = vld [vmem:[%s514_s1 + $0xf8] sm:$0xff]  ;;  %260 = vmatprep.subr.mxu1 %v297_v1  ;;  %v53_v2 = vld [vmem:[%s514_s1 + $0xf0] sm:$0xff]  ;;  %147 = vmatprep.mubr.f32.mxu0 %v297_v1  ;;  %v52_v4 = vld [vmem:[%s514_s1 + $0xe8] sm:$0xff] }
   0x2   :  { %v70_v3 = vld [vmem:[%s515_s2 + $0x78] sm:$0xff]  ;;  %83 = vmatprep.subr.mxu0 %v54_v0  ;;  %v51_v5 = vld [vmem:[%s514_s1 + $0xe0] sm:$0xff]  ;;  %v69_v6 = vld [vmem:[%s515_s2 + $0x70] sm:$0xff]  ;;  %292 = vmatprep.mubr.msk.f32.mxu1 %vm298_vm0, %v297_v1  ;;  %v74_v51 = vshrl.u32 %v73_v50, 7 }
   0x3   :  { %261 = vmatpush3.msra.mxu1 %v70_v3  ;;  %84 = vmatpush1.msra.mxu0 %v53_v2  ;;  %v50_v7 = vld [vmem:[%s514_s1 + $0xd8] sm:$0xff]  ;;  %v68_v8 = vld [vmem:[%s515_s2 + $0x68] sm:$0xff]  ;;  %v49_v9 = vld [vmem:[%s514_s1 + $0xd0] sm:$0xff] }
   0x4   :  { %262 = vmatprep.subr.mxu1 %v297_v1  ;;  %85 = vmatprep.subr.mxu0 %v52_v4  ;;  %v48_v10 = vld [vmem:[%s514_s1 + $0xc8] sm:$0xff]  ;;  %v67_v11 = vld [vmem:[%s515_s2 + $0x60] sm:$0xff]  ;;  %v46_v13 = vld [vmem:[%s514_s1 + $0xb8] sm:$0xff]  ;;  %v75_v52 = vsub.s32 0, %v74_v51  ;;  %v79_v54 = vsub.s32 1, %v74_v51 }
   0x5   :  { %263 = vmatpush3.msra.mxu1 %v69_v6  ;;  %86 = vmatpush1.msra.mxu0 %v51_v5  ;;  %v47_v12 = vld [vmem:[%s514_s1 + $0xc0] sm:$0xff]  ;;  %v66_v14 = vld [vmem:[%s515_s2 + $0x58] sm:$0xff]  ;;  %v45_v15 = vld [vmem:[%s514_s1 + $0xb0] sm:$0xff] }
   0x6   :  { %264 = vmatprep.subr.mxu1 %v297_v1  ;;  %87 = vmatprep.subr.mxu0 %v50_v7  ;;  %v44_v16 = vld [vmem:[%s514_s1 + $0xa8] sm:$0xff]  ;;  %v65_v17 = vld [vmem:[%s515_s2 + $0x50] sm:$0xff]  ;;  %v43_v18 = vld [vmem:[%s514_s1 + $0xa0] sm:$0xff] }
   0x7   :  { %265 = vmatpush3.msra.mxu1 %v68_v8  ;;  %88 = vmatpush1.msra.mxu0 %v49_v9  ;;  %v42_v19 = vld [vmem:[%s514_s1 + $0x98] sm:$0xff]  ;;  %v64_v20 = vld [vmem:[%s515_s2 + $0x48] sm:$0xff]  ;;  %v41_v21 = vld [vmem:[%s514_s1 + $0x90] sm:$0xff] }
   0x8   :  { %266 = vmatprep.subr.mxu1 %v297_v1  ;;  %89 = vmatprep.subr.mxu0 %v48_v10  ;;  %v40_v22 = vld [vmem:[%s514_s1 + $0x88] sm:$0xff]  ;;  %v63_v23 = vld [vmem:[%s515_s2 + $0x40] sm:$0xff]  ;;  %v38_v25 = vld [vmem:[%s514_s1 + $0x78] sm:$0xff] }
   0x9   :  { %267 = vmatpush3.msra.mxu1 %v67_v11  ;;  %90 = vmatpush1.msra.mxu0 %v47_v12  ;;  %v39_v24 = vld [vmem:[%s514_s1 + $0x80] sm:$0xff]  ;;  %v62_v26 = vld [vmem:[%s515_s2 + $0x38] sm:$0xff]  ;;  %v37_v27 = vld [vmem:[%s514_s1 + $0x70] sm:$0xff] }
   0xa   :  { %268 = vmatprep.subr.mxu1 %v297_v1  ;;  %91 = vmatprep.subr.mxu0 %v46_v13  ;;  %v36_v28 = vld [vmem:[%s514_s1 + $0x68] sm:$0xff]  ;;  %v61_v29 = vld [vmem:[%s515_s2 + $0x30] sm:$0xff]  ;;  %v35_v30 = vld [vmem:[%s514_s1 + $0x60] sm:$0xff] }
   0xb   :  { %269 = vmatpush3.msra.mxu1 %v66_v14  ;;  %92 = vmatpush1.msra.mxu0 %v45_v15  ;;  %v34_v31 = vld [vmem:[%s514_s1 + $0x58] sm:$0xff]  ;;  %v60_v32 = vld [vmem:[%s515_s2 + $0x28] sm:$0xff]  ;;  %v33_v33 = vld [vmem:[%s514_s1 + $0x50] sm:$0xff] }
   0xc   :  { %270 = vmatprep.subr.mxu1 %v297_v1  ;;  %93 = vmatprep.subr.mxu0 %v44_v16  ;;  %v32_v34 = vld [vmem:[%s514_s1 + $0x48] sm:$0xff]  ;;  %v59_v35 = vld [vmem:[%s515_s2 + $0x20] sm:$0xff]  ;;  %v30_v37 = vld [vmem:[%s514_s1 + $0x38] sm:$0xff] }
   0xd   :  { %271 = vmatpush3.msra.mxu1 %v65_v17  ;;  %94 = vmatpush1.msra.mxu0 %v43_v18  ;;  %v31_v36 = vld [vmem:[%s514_s1 + $0x40] sm:$0xff]  ;;  %v58_v38 = vld [vmem:[%s515_s2 + $0x18] sm:$0xff]  ;;  %v29_v39 = vld [vmem:[%s514_s1 + $0x30] sm:$0xff] }
   0xe   :  { %272 = vmatprep.subr.mxu1 %v297_v1  ;;  %95 = vmatprep.subr.mxu0 %v42_v19  ;;  %v28_v40 = vld [vmem:[%s514_s1 + $0x28] sm:$0xff]  ;;  %v57_v41 = vld [vmem:[%s515_s2 + $0x10] sm:$0xff]  ;;  %v27_v42 = vld [vmem:[%s514_s1 + $0x20] sm:$0xff] }
   0xf   :  { %273 = vmatpush3.msra.mxu1 %v64_v20  ;;  %96 = vmatpush1.msra.mxu0 %v41_v21  ;;  %v26_v43 = vld [vmem:[%s514_s1 + $0x18] sm:$0xff]  ;;  %v56_v44 = vld [vmem:[%s515_s2 + $0x8] sm:$0xff]  ;;  %v25_v45 = vld [vmem:[%s514_s1 + $0x10] sm:$0xff] }
  0x10   :  { %274 = vmatprep.subr.mxu1 %v297_v1  ;;  %97 = vmatprep.subr.mxu0 %v40_v22  ;;  %v24_v46 = vld [vmem:[%s514_s1 + $0x8] sm:$0xff]  ;;  %v55_v47 = vld [vmem:[%s515_s2] sm:$0xff] }
  0x11   :  { %275 = vmatpush3.msra.mxu1 %v63_v23  ;;  %98 = vmatpush1.msra.mxu0 %v39_v24  ;;  %v23_v48 = vld [vmem:[%s514_s1] sm:$0xff] }
  0x12   :  { %276 = vmatprep.subr.mxu1 %v297_v1  ;;  %99 = vmatprep.subr.mxu0 %v38_v25  ;;  %v22_v49 = vld [vmem:[%s516_s0] sm:$0xff] }
  0x13   :  { %277 = vmatpush3.msra.mxu1 %v62_v26  ;;  %100 = vmatpush1.msra.mxu0 %v37_v27  ;;  %v71_v53 = vld [vmem:[%s517_s3] sm:$0x3] }
  0x14   :  { %278 = vmatprep.subr.mxu1 %v297_v1  ;;  %101 = vmatprep.subr.mxu0 %v36_v28  ;;  %v76_v55 = vrot.slane %v71_v53, %v75_v52  ;;  %v242_v56 = vld [vmem:[%s518_s4] ss:$0 sm:$0xff]  ;;  %v80_v57 = vrot.slane %v71_v53, %v79_v54 }
  0x15   :  { %279 = vmatpush3.msra.mxu1 %v61_v29  ;;  %102 = vmatpush1.msra.mxu0 %v35_v30 }
  0x16   :  { %280 = vmatprep.subr.mxu1 %v297_v1  ;;  %103 = vmatprep.subr.mxu0 %v34_v31 }
  0x17   :  { %281 = vmatpush3.msra.mxu1 %v60_v32  ;;  %104 = vmatpush1.msra.mxu0 %v33_v33 }
  0x18   :  { %282 = vmatprep.subr.mxu1 %v297_v1  ;;  %105 = vmatprep.subr.mxu0 %v32_v34 }
  0x19   :  { %283 = vmatpush3.msra.mxu1 %v59_v35  ;;  %106 = vmatpush1.msra.mxu0 %v31_v36 }
  0x1a   :  { %284 = vmatprep.subr.mxu1 %v297_v1  ;;  %107 = vmatprep.subr.mxu0 %v30_v37 }
  0x1b   :  { %285 = vmatpush3.msra.mxu1 %v58_v38  ;;  %108 = vmatpush1.msra.mxu0 %v29_v39 }
  0x1c   :  { %286 = vmatprep.subr.mxu1 %v297_v1  ;;  %109 = vmatprep.subr.mxu0 %v28_v40 }
  0x1d   :  { %287 = vmatpush3.msra.mxu1 %v57_v41  ;;  %110 = vmatpush1.msra.mxu0 %v27_v42 }
  0x1e   :  { %288 = vmatprep.subr.mxu1 %v297_v1  ;;  %111 = vmatprep.subr.mxu0 %v26_v43 }
  0x1f   :  { %289 = vmatpush3.msra.mxu1 %v56_v44  ;;  %112 = vmatpush1.msra.mxu0 %v25_v45 }
  0x20   :  { %290 = vmatprep.subr.mxu1 %v297_v1  ;;  %113 = vmatprep.subr.mxu0 %v24_v46 }
  0x21   :  { %291 = vmatpush3.msra.mxu1 %v55_v47  ;;  %114 = vmatpush1.msra.mxu0 %v23_v48 }
  0x22   :  { %148 = vmatmul.mubr.f32.vlgmr.msra.gmra.mxu0 %v22_v49  ;;  %293 = vmatmul.mubr.f32.vlgmr.msra.gmra.mxu1 %v22_v49 }
  0xe2   :  { %v149_v58 = vpop.f32.mrf.mxu0  ;;  %v229_v59 = vpop.f32.mrf.mxu1 }
  0xe3   :  { %v150_v60 = vadd.f32 %v149_v58, %v76_v55  ;;  %v230_v61 = vadd.f32 %v242_v56, %v229_v59 }
  0xe4   :  { %v151_v62 = vpop.f32.mrf.mxu0  ;;  %v294_v63 = vpop.f32.mrf.mxu1 }
  0xe5   :  { %154 = vst [vmem:[%s519_s5] sm:$0xff] %v150_v60  ;;  %233 = vst [vmem:[%s520_s6] sm:$0xff] %v230_v61  ;;  %v152_v0 = vadd.f32 %v151_v62, %v80_v57 }
  0xe7   :  { %155 = vst [vmem:[%s519_s5 + $0x8] sm:$0xff] %v152_v0 }

</bundles_post_ra>
